<compile_context>
chip_gen: v6e
topology: v6e:2x2x1
jax: 0.10.0
libtpu: 0.0.40
codegen_flags: <defaults>
</compile_context>

<pallas_src>
import functools

import jax
import jax.numpy as jnp
from jax.experimental import pallas as pl
from jax.experimental.pallas import tpu as pltpu


# ---------------------------------------------------------------------------
# Pass 1: global average pool (tiled reduction) + squeeze MLP + sigmoid
# ---------------------------------------------------------------------------
def _pool_scale_kernel(x_ref, w1_ref, b1_ref, w2_ref, b2_ref, scale_ref,
                       acc_ref, *, inv_hw, slabs_per_tile):
    # x_ref:  (B, C, tile_hw)   w1_ref: (C, Ch)   b1_ref: (1, Ch)
    # w2_ref: (Ch, C)           b2_ref: (1, C)    scale_ref: (B, C)
    # acc_ref: (B, C, 128) f32 scratch (persists across HW grid steps)
    k = pl.program_id(0)

    @pl.when(k == 0)
    def _init():
        acc_ref[...] = jnp.zeros_like(acc_ref)

    # VPU accumulation: add each 128-lane slab of this HW tile into the
    # 128-wide accumulator (plain vector adds, re-reading x_ref per slab).
    for j in range(slabs_per_tile):
        acc_ref[...] += x_ref[:, :, j * 128:(j + 1) * 128]

    @pl.when(k == pl.num_programs(0) - 1)
    def _finalize():
        # Single cross-lane reduce at the very end; multiply by precomputed
        # 1/HW (true HW, not padded) instead of dividing.
        pooled = jnp.sum(acc_ref[...], axis=-1) * inv_hw            # (B, C)
        h = jnp.dot(pooled, w1_ref[...],
                    preferred_element_type=jnp.float32) + b1_ref[...]
        h = jnp.maximum(h, 0.0)                                     # (B, Ch)
        logits = jnp.dot(h, w2_ref[...],
                         preferred_element_type=jnp.float32) + b2_ref[...]
        scale_ref[...] = jax.nn.sigmoid(logits)                     # (B, C)


# ---------------------------------------------------------------------------
# Pass 2: tiled, pipelined per-channel rescale (mem-bound broadcast multiply)
# ---------------------------------------------------------------------------
def _rescale_kernel(x_ref, scale_ref, o_ref):
    # x_ref/o_ref: (1, C, tile_hw)   scale_ref: (1, C, 1)
    o_ref[...] = x_ref[...] * scale_ref[...]


def _round_up(a, m):
    return ((a + m - 1) // m) * m


def channel_attention(x, w1, b1, w2, b2, *, max_tile_hw=1024):
    """x: (B, C, H, W) f32.  w1: (C, C//4), b1: (C//4,), w2: (C//4, C), b2: (C,)."""
    B, C, H, W = x.shape
    Ch = w1.shape[1]
    HW = H * W

    # --- choose a lane-dense HW tile (multiple of 128) with a VMEM budget ---
    hw_128 = _round_up(HW, 128)
    tile_hw = min(max_tile_hw, hw_128)
    tile_hw = max(128, (tile_hw // 128) * 128)
    # Keep the pass-1 block (B, C, tile_hw) f32 under ~4 MiB so double
    # buffering fits the default scoped VMEM on every TPU generation.
    while tile_hw > 128 and B * C * tile_hw * 4 > 4 * 1024 * 1024:
        tile_hw //= 2
    hw_pad = _round_up(hw_128, tile_hw)
    num_hw_tiles = hw_pad // tile_hw

    x_flat = x.reshape(B, C, HW)
    if hw_pad != HW:
        # Zero padding: does not perturb the pooled sum (we divide by true HW)
        # and the padded tail is sliced off after the rescale pass.
        x_flat = jnp.pad(x_flat, ((0, 0), (0, 0), (0, hw_pad - HW)))

    b1_2d = b1.reshape(1, Ch)
    b2_2d = b2.reshape(1, C)

    # ---------------- Pass 1: pooled sums + tiny MLP -> scale ----------------
    pool_kernel = functools.partial(
        _pool_scale_kernel,
        inv_hw=1.0 / float(HW),
        slabs_per_tile=tile_hw // 128,
    )
    scale = pl.pallas_call(
        pool_kernel,
        out_shape=jax.ShapeDtypeStruct((B, C), jnp.float32),
        grid=(num_hw_tiles,),
        in_specs=[
            pl.BlockSpec((B, C, tile_hw), lambda k: (0, 0, k)),
            pl.BlockSpec((C, Ch), lambda k: (0, 0)),
            pl.BlockSpec((1, Ch), lambda k: (0, 0)),
            pl.BlockSpec((Ch, C), lambda k: (0, 0)),
            pl.BlockSpec((1, C), lambda k: (0, 0)),
        ],
        out_specs=pl.BlockSpec((B, C), lambda k: (0, 0)),
        scratch_shapes=[pltpu.VMEM((B, C, 128), jnp.float32)],
        compiler_params=pltpu.CompilerParams(
            dimension_semantics=("arbitrary",)),
    )(x_flat, w1, b1_2d, w2, b2_2d)

    # ------------- Pass 2: tiled broadcast multiply over (B, HW) -------------
    scale3 = scale.astype(x.dtype)[:, :, None]                      # (B, C, 1)
    out_flat = pl.pallas_call(
        _rescale_kernel,
        out_shape=jax.ShapeDtypeStruct((B, C, hw_pad), x.dtype),
        grid=(B, num_hw_tiles),
        in_specs=[
            pl.BlockSpec((1, C, tile_hw), lambda b, j: (b, 0, j)),
            pl.BlockSpec((1, C, 1), lambda b, j: (b, 0, 0)),
        ],
        out_specs=pl.BlockSpec((1, C, tile_hw), lambda b, j: (b, 0, j)),
        compiler_params=pltpu.CompilerParams(
            dimension_semantics=("parallel", "parallel")),
    )(x_flat, scale3)

    return out_flat[:, :, :HW].reshape(B, C, H, W)


def reference_channel_attention(x, w1, b1, w2, b2):
    """Pure-JAX reference mirroring the PyTorch module."""
    pooled = jnp.mean(x, axis=(2, 3))                               # (B, C)
    h = jnp.maximum(pooled @ w1 + b1, 0.0)                          # (B, C//4)
    s = jax.nn.sigmoid(h @ w2 + b2)                                 # (B, C)
    return x * s[:, :, None, None]


if __name__ == "__main__":
    key = jax.random.PRNGKey(0)
    kx, kw1, kb1, kw2, kb2, kx2 = jax.random.split(key, 6)

    B, C, H, W = 2, 16, 16, 16
    Ch = C // 4

    x = jax.random.normal(kx, (B, C, H, W), dtype=jnp.float32)
    # Linear weights stored as (in, out) so the kernel does row-major matmuls.
    w1 = jax.random.normal(kw1, (C, Ch), dtype=jnp.float32) * 0.1
    b1 = jax.random.normal(kb1, (Ch,), dtype=jnp.float32) * 0.1
    w2 = jax.random.normal(kw2, (Ch, C), dtype=jnp.float32) * 0.1
    b2 = jax.random.normal(kb2, (C,), dtype=jnp.float32) * 0.1

    out = channel_attention(x, w1, b1, w2, b2)
    out = jax.block_until_ready(out)
    ref = reference_channel_attention(x, w1, b1, w2, b2)
    assert out.shape == (B, C, H, W)
    assert jnp.allclose(out, ref, atol=1e-5, rtol=1e-5), "mismatch vs reference"

    # Also exercise the HW-padding path (H*W = 144, not a multiple of 128).
    x2 = jax.random.normal(kx2, (B, C, 12, 12), dtype=jnp.float32)
    out2 = jax.block_until_ready(channel_attention(x2, w1, b1, w2, b2))
    ref2 = reference_channel_attention(x2, w1, b1, w2, b2)
    assert jnp.allclose(out2, ref2, atol=1e-5, rtol=1e-5), "mismatch (padded HW)"

    print("KERNEL_OK")
</pallas_src>

<mosaic_0001>
module attributes {stable_mosaic.version = 11 : i64} {
  func.func @_pool_scale_kernel(%arg0: i32, %arg1: memref<2x16x256xf32, #tpu.memory_space<vmem>>, %arg2: memref<16x4xf32, #tpu.memory_space<vmem>>, %arg3: memref<1x4xf32, #tpu.memory_space<vmem>>, %arg4: memref<4x16xf32, #tpu.memory_space<vmem>>, %arg5: memref<1x16xf32, #tpu.memory_space<vmem>>, %arg6: memref<2x16xf32, #tpu.memory_space<vmem>>, %arg7: memref<2x16x128xf32, #tpu.memory_space<vmem>>) attributes {dimension_semantics = [#tpu.dimension_semantics<arbitrary>], iteration_bounds = array<i64: 1>, scalar_prefetch = 0 : i64, scratch_operands = 1 : i64, tpu.core_type = #tpu.core_type<tc>, window_params = [{transform_indices = @transform_0, window_bounds = array<i64: 2, 16, 256>}, {pipeline_mode = #tpu.pipeline_mode<synchronous>, transform_indices = @transform_1, window_bounds = array<i64: 16, 4>}, {pipeline_mode = #tpu.pipeline_mode<synchronous>, transform_indices = @transform_2, window_bounds = array<i64: 1, 4>}, {pipeline_mode = #tpu.pipeline_mode<synchronous>, transform_indices = @transform_3, window_bounds = array<i64: 4, 16>}, {pipeline_mode = #tpu.pipeline_mode<synchronous>, transform_indices = @transform_4, window_bounds = array<i64: 1, 16>}, {pipeline_mode = #tpu.pipeline_mode<synchronous>, transform_indices = @transform_5, window_bounds = array<i64: 2, 16>}]} {
    %c0_i32 = arith.constant 0 : i32
    %0 = arith.cmpi eq, %arg0, %c0_i32 : i32
    %1 = arith.extui %0 : i1 to i32
    %c0_i32_0 = arith.constant 0 : i32
    %2 = arith.cmpi ne, %1, %c0_i32_0 : i32
    scf.if %2 {
      %cst = arith.constant 0.000000e+00 : f32
      %14 = vector.broadcast %cst : f32 to vector<2x16x128xf32>
      %c0_19 = arith.constant 0 : index
      %c0_20 = arith.constant 0 : index
      %c0_21 = arith.constant 0 : index
      %15 = vector.load %arg7[%c0_19, %c0_20, %c0_21] : memref<2x16x128xf32, #tpu.memory_space<vmem>>, vector<2x16x128xf32>
      tpu.vector_store %arg7[%c0_19, %c0_20, %c0_21], %14 {strides = array<i32>} : memref<2x16x128xf32, #tpu.memory_space<vmem>>, vector<2x16x128xf32>,
    } else {
    }
    %c0 = arith.constant 0 : index
    %c0_1 = arith.constant 0 : index
    %c0_2 = arith.constant 0 : index
    %3 = vector.load %arg7[%c0, %c0_1, %c0_2] : memref<2x16x128xf32, #tpu.memory_space<vmem>>, vector<2x16x128xf32>
    %c0_3 = arith.constant 0 : index
    %c0_4 = arith.constant 0 : index
    %c0_5 = arith.constant 0 : index
    %4 = vector.load %arg1[%c0_3, %c0_4, %c0_5] : memref<2x16x256xf32, #tpu.memory_space<vmem>>, vector<2x16x128xf32>
    %5 = arith.addf %3, %4 : vector<2x16x128xf32>
    %c0_6 = arith.constant 0 : index
    %c0_7 = arith.constant 0 : index
    %c0_8 = arith.constant 0 : index
    %6 = vector.load %arg7[%c0_6, %c0_7, %c0_8] : memref<2x16x128xf32, #tpu.memory_space<vmem>>, vector<2x16x128xf32>
    tpu.vector_store %arg7[%c0_6, %c0_7, %c0_8], %5 {strides = array<i32>} : memref<2x16x128xf32, #tpu.memory_space<vmem>>, vector<2x16x128xf32>,
    %c0_9 = arith.constant 0 : index
    %c0_10 = arith.constant 0 : index
    %c0_11 = arith.constant 0 : index
    %7 = vector.load %arg7[%c0_9, %c0_10, %c0_11] : memref<2x16x128xf32, #tpu.memory_space<vmem>>, vector<2x16x128xf32>
    %c0_12 = arith.constant 0 : index
    %c0_13 = arith.constant 0 : index
    %c128 = arith.constant 128 : index
    %8 = vector.load %arg1[%c0_12, %c0_13, %c128] : memref<2x16x256xf32, #tpu.memory_space<vmem>>, vector<2x16x128xf32>
    %9 = arith.addf %7, %8 : vector<2x16x128xf32>
    %c0_14 = arith.constant 0 : index
    %c0_15 = arith.constant 0 : index
    %c0_16 = arith.constant 0 : index
    %10 = vector.load %arg7[%c0_14, %c0_15, %c0_16] : memref<2x16x128xf32, #tpu.memory_space<vmem>>, vector<2x16x128xf32>
    tpu.vector_store %arg7[%c0_14, %c0_15, %c0_16], %9 {strides = array<i32>} : memref<2x16x128xf32, #tpu.memory_space<vmem>>, vector<2x16x128xf32>,
    %c0_i32_17 = arith.constant 0 : i32
    %11 = arith.cmpi eq, %arg0, %c0_i32_17 : i32
    %12 = arith.extui %11 : i1 to i32
    %c0_i32_18 = arith.constant 0 : i32
    %13 = arith.cmpi ne, %12, %c0_i32_18 : i32
    scf.if %13 {
      %c0_19 = arith.constant 0 : index
      %c0_20 = arith.constant 0 : index
      %c0_21 = arith.constant 0 : index
      %14 = vector.load %arg7[%c0_19, %c0_20, %c0_21] : memref<2x16x128xf32, #tpu.memory_space<vmem>>, vector<2x16x128xf32>
      %cst = arith.constant dense<0.000000e+00> : vector<2x16xf32>
      %15 = vector.multi_reduction <add>, %14, %cst [2] : vector<2x16x128xf32> to vector<2x16xf32>
      %cst_22 = arith.constant 3.906250e-03 : f32
      %16 = vector.broadcast %cst_22 : f32 to vector<2x16xf32>
      %17 = arith.mulf %15, %16 : vector<2x16xf32>
      %c0_23 = arith.constant 0 : index
      %c0_24 = arith.constant 0 : index
      %18 = vector.load %arg2[%c0_23, %c0_24] : memref<16x4xf32, #tpu.memory_space<vmem>>, vector<16x4xf32>
      %cst_25 = arith.constant dense<0.000000e+00> : vector<2x4xf32>
      %19 = tpu.matmul %17, %18, %cst_25 {dimension_numbers = #tpu.dot_dimension_numbers<[1], [0], [0], [1], [0, 0, 1, 1], [], []>} : vector<2x16xf32>, vector<16x4xf32>, vector<2x4xf32> -> vector<2x4xf32>
      %c0_26 = arith.constant 0 : index
      %c0_27 = arith.constant 0 : index
      %20 = vector.load %arg3[%c0_26, %c0_27] : memref<1x4xf32, #tpu.memory_space<vmem>>, vector<1x4xf32>
      %21 = vector.broadcast %20 : vector<1x4xf32> to vector<2x4xf32>
      %22 = arith.addf %19, %21 : vector<2x4xf32>
      %cst_28 = arith.constant 0.000000e+00 : f32
      %23 = vector.broadcast %cst_28 : f32 to vector<2x4xf32>
      %24 = arith.maximumf %22, %23 : vector<2x4xf32>
      %c0_29 = arith.constant 0 : index
      %c0_30 = arith.constant 0 : index
      %25 = vector.load %arg4[%c0_29, %c0_30] : memref<4x16xf32, #tpu.memory_space<vmem>>, vector<4x16xf32>
      %cst_31 = arith.constant dense<0.000000e+00> : vector<2x16xf32>
      %26 = tpu.matmul %24, %25, %cst_31 {dimension_numbers = #tpu.dot_dimension_numbers<[1], [0], [0], [1], [0, 0, 1, 1], [], []>} : vector<2x4xf32>, vector<4x16xf32>, vector<2x16xf32> -> vector<2x16xf32>
      %c0_32 = arith.constant 0 : index
      %c0_33 = arith.constant 0 : index
      %27 = vector.load %arg5[%c0_32, %c0_33] : memref<1x16xf32, #tpu.memory_space<vmem>>, vector<1x16xf32>
      %28 = vector.broadcast %27 : vector<1x16xf32> to vector<2x16xf32>
      %29 = arith.addf %26, %28 : vector<2x16xf32>
      %30 = arith.negf %29 : vector<2x16xf32>
      %31 = math.exp %30 : vector<2x16xf32>
      %cst_34 = arith.constant 1.000000e+00 : f32
      %32 = vector.broadcast %cst_34 : f32 to vector<2x16xf32>
      %33 = arith.addf %32, %31 : vector<2x16xf32>
      %34 = arith.divf %32, %33 : vector<2x16xf32>
      %c0_35 = arith.constant 0 : index
      %c0_36 = arith.constant 0 : index
      %35 = vector.load %arg6[%c0_35, %c0_36] : memref<2x16xf32, #tpu.memory_space<vmem>>, vector<2x16xf32>
      tpu.vector_store %arg6[%c0_35, %c0_36], %34 {strides = array<i32>} : memref<2x16xf32, #tpu.memory_space<vmem>>, vector<2x16xf32>,
    } else {
    }
    return
  }
  func.func @transform_0(%arg0: i32) -> (i32, i32, i32) {
    %c0_i32 = arith.constant 0 : i32
    %c0_i32_0 = arith.constant 0 : i32
    %c0_i32_1 = arith.constant 0 : i32
    return %c0_i32, %c0_i32_0, %arg0 : i32, i32, i32
  }
  func.func @transform_1(%arg0: i32) -> (i32, i32) {
    %c0_i32 = arith.constant 0 : i32
    %c0_i32_0 = arith.constant 0 : i32
    %c0_i32_1 = arith.constant 0 : i32
    return %c0_i32, %c0_i32_0 : i32, i32
  }
  func.func @transform_2(%arg0: i32) -> (i32, i32) {
    %c0_i32 = arith.constant 0 : i32
    %c0_i32_0 = arith.constant 0 : i32
    %c0_i32_1 = arith.constant 0 : i32
    return %c0_i32, %c0_i32_0 : i32, i32
  }
  func.func @transform_3(%arg0: i32) -> (i32, i32) {
    %c0_i32 = arith.constant 0 : i32
    %c0_i32_0 = arith.constant 0 : i32
    %c0_i32_1 = arith.constant 0 : i32
    return %c0_i32, %c0_i32_0 : i32, i32
  }
  func.func @transform_4(%arg0: i32) -> (i32, i32) {
    %c0_i32 = arith.constant 0 : i32
    %c0_i32_0 = arith.constant 0 : i32
    %c0_i32_1 = arith.constant 0 : i32
    return %c0_i32, %c0_i32_0 : i32, i32
  }
  func.func @transform_5(%arg0: i32) -> (i32, i32) {
    %c0_i32 = arith.constant 0 : i32
    %c0_i32_0 = arith.constant 0 : i32
    %c0_i32_1 = arith.constant 0 : i32
    return %c0_i32, %c0_i32_0 : i32, i32
  }
}

</mosaic_0001>

<bundles_post_ra>
// kernel: tpu_custom_call.1
= control target key start
LH: loop header
LB: loop body
LE: loop exit
PB: predicated region body
PF: predicated region fallthrough
CT: control target
= control target key end

     0   :  { %10 = vsyncpa [#allocation4], 0  ;;  %s448_s0 = inlined_call_operand.hbm [shape: f32[2,16,256], index: 0, kind: input, shape index: {}]   ;;  %s449_s1 = inlined_call_operand.vmem [shape: f32[16,4], index: 1, kind: input, shape index: {}]   ;;  %s450_s2 = inlined_call_operand.vmem [shape: f32[1,4], index: 2, kind: input, shape index: {}]   ;;  %s451_s3 = inlined_call_operand.vmem [shape: f32[4,16], index: 3, kind: input, shape index: {}]   ;;  %s452_s4 = inlined_call_operand.vmem [shape: f32[1,16], index: 4, kind: input, shape index: {}]   ;;  %s453_s5 = inlined_call_operand.hbm [shape: f32[2,16], index: 5, kind: output, shape index: {}]  }
   0x1   :  { %11 = vsyncpa [#allocation5], 0  ;;  %s391_s18 = smov [#allocation3]  }
   0x2   :  { %s17_s19 = sshll.u32 %s391_s18, 4  ;;  %s18_s19 = int_to_ptr.vmem [resolvable:$true] %s17_s19 }
   0x3   :  { %s355_s20 = scalar_lea.vmem %s18_s19, 1024  ;;  %p360_p1 = scmp.lt.s32.totalorder %s18_s19, %s18_s19 }
   0x4   :  { %p356_p0 = scmp.ne.s32.totalorder %s18_s19, %s355_s20  ;;  %p361_p2 = scmp.lt.s32.totalorder %s355_s20, %s355_s20 }
   0x6   :  { %p362_p3 = por %p361_p2, %p360_p1 }
   0x8   :  { %p363_p4 = pnand %p362_p3, %p356_p0 }
   0xa   :  { %366 = shalt.err (!%p363_p4)
}
   0xb   :  { %s392_s21 = smov 256   ;;  %s393_s22 = smov 16  }
   0xc   :  { %23 = dma.hbm_to_vmem [thread:$0]  %s448_s0, 1024, %s18_s19, [#allocation4], %s392_s21, %s392_s21, %s393_s22  }
   0xd   :  { %387 = dma.done.wait [#allocation4], 1024  }
   0xe   :  { %388 = vsyncadd [#allocation4], 4294966272  ;;  %v49_v0 = vld [vmem:[#allocation3 + $0x20] sm:$0xff]  ;;  %v65_v1 = vld [vmem:[#allocation3 + $0x28] sm:$0xff]  ;;  %v394_v12 = vmov 0.0   ;;  %vm395_vm0 = vmmov 0   ;;  %v107_v15 = vlaneseq }
   0xf   :  { %v47_v2 = vld [vmem:[#allocation3] sm:$0xff]  ;;  %v69_v3 = vadd.f32 %v65_v1, %v49_v0  ;;  %v63_v4 = vld [vmem:[#allocation3 + $0x8] sm:$0xff]  ;;  %v50_v5 = vld [vmem:[#allocation3 + $0x30] sm:$0xff]  ;;  %325 = vmatprep.subr.mxu0 %v394_v12  ;;  %332 = vmatprep.subr.mxu1 %v394_v12  ;;  %vm118_vm1 = vcmask 130112   ;;  %vm129_vm2 = vcmask 1041409   ;;  %vm131_vm3 = vcmask 130048  }
  0x10   :  { %v66_v6 = vld [vmem:[#allocation3 + $0x38] sm:$0xff]  ;;  %v67_v7 = vadd.f32 %v63_v4, %v47_v2  ;;  %v48_v8 = vld [vmem:[#allocation3 + $0x10] sm:$0xff]  ;;  %v95_v13 = vld [vmem:[%s449_s1 + $0x8] sm:$0xff]  ;;  %329 = vmatprep.mubr.msk.f32.mxu0 %vm395_vm0, %v394_v12  ;;  %334 = vmatprep.mubr.msk.f32.mxu1 %vm395_vm0, %v394_v12  ;;  %v108_v16 = vand.u32 127, %v107_v15  ;;  %v110_v17 = vshrl.u32 %v107_v15, 7  ;;  %vm217_vm4 = vcmask 1043456  }
  0x11   :  { %v64_v9 = vld [vmem:[#allocation3 + $0x18] sm:$0xff]  ;;  %86 = vadd.xlane.f32.xlu1 %v69_v3  ;;  %v70_v10 = vadd.f32 %v66_v6, %v50_v5  ;;  %v94_v14 = vld [vmem:[%s449_s1] sm:$0xff]  ;;  %326 = vmatpush3.msra.mxu0 %v95_v13  ;;  %vm213_vm5 = vcmask 31744   ;;  %vm297_vm6 = vcmask 123904  }
  0x12   :  { %82 = vadd.xlane.f32.xlu0 %v67_v7  ;;  %v68_v11 = vadd.f32 %v64_v9, %v48_v8  ;;  %327 = vmatprep.subr.mxu0 %v394_v12  ;;  %v113_v18 = vadd.s32 4294967288, %v108_v16  ;;  %v111_v21 = vsub.s32 %v108_v16, %v110_v17  ;;  %v205_v36 = vld [vmem:[%s451_s3] sm:$0xf]  ;;  %s396_s3 = smov [#allocation6]  }
  0x13   :  { %328 = vmatpush3.msra.mxu0 %v94_v14  ;;  %333 = vmatpush3.msk.msra.mxu1 %vm217_vm4, %v205_v36  ;;  %v314_v37 = vld [vmem:[%s450_s2] ss:$0 sm:$0xff]  ;;  %s305_s2 = sshll.u32 %s396_s3, 4  ;;  %s306_s2 = int_to_ptr.vmem [resolvable:$true] %s305_s2 }
  0x14   :  { %v116_v23 = vsub.s32 %v113_v18, %v110_v17  ;;  %v316_v42 = vld [vmem:[%s452_s4] ss:$0 sm:$0xff]  ;;  %s367_s8 = scalar_lea.vmem %s306_s2, 32  ;;  %p372_p6 = scmp.lt.s32.totalorder %s306_s2, %s306_s2 }
  0x15   :  { %88 = vadd.xlane.f32.xlu1 %v70_v10  ;;  %p368_p5 = scmp.ne.s32.totalorder %s306_s2, %s367_s8  ;;  %p373_p7 = scmp.lt.s32.totalorder %s367_s8, %s367_s8 }
  0x16   :  { %84 = vadd.xlane.f32.xlu0 %v68_v11 }
  0x17   :  { %p374_p8 = por %p373_p7, %p372_p6 }
  0x19   :  { %p375_p9 = pnand %p374_p8, %p368_p5 }
  0x9a   :  { %v87_v19 = vpop.xlane.xlu1 %86 }
  0x9b   :  { %v83_v20 = vpop.xlane.xlu0 %82  ;;  %v92_v22 = vmul.f32 0.00390625, %v87_v19 }
  0x9c   :  { %v90_v24 = vmul.f32 0.00390625, %v83_v20 }
  0x9d   :  { %v123_v29 = vrot.slane %v92_v22, %v111_v21 }
  0x9e   :  { %v89_v25 = vpop.xlane.xlu1 %88  ;;  %v112_v31 = vrot.slane %v90_v24, %v111_v21 }
  0x9f   :  { %v93_v26 = vmul.f32 0.00390625, %v89_v25  ;;  %v85_v27 = vpop.xlane.xlu0 %84 }
  0xa0   :  { %v91_v28 = vmul.f32 0.00390625, %v85_v27 }
  0xa1   :  { %v127_v30 = vrot.slane %v93_v26, %v116_v23 }
  0xa2   :  { %v117_v32 = vrot.slane %v91_v28, %v116_v23 }
  0xa3   :  { %v128_v33 = vsel %vm118_vm1, %v127_v30, %v123_v29 }
  0xa4   :  { %v119_v34 = vsel %vm118_vm1, %v117_v32, %v112_v31 }
  0xa5   :  { %v130_v35 = vsel %vm129_vm2, %v128_v33, %v119_v34 }
  0xa6   :  { %330 = vmatmul.mubr.msk.f32.vlgmr.msra.gmra.mxu0 %vm131_vm3, %v130_v35 }
 0x166   :  { %v200_v38 = vpop.f32.mrf.mxu0 }
 0x167   :  { %v201_v39 = vadd.f32 %v314_v37, %v200_v38 }
 0x168   :  { %v331_v40 = vpop.f32.mrf.mxu0 }
 0x169   :  { %v204_v41 = vmax.f32 %v201_v39, 0.0 }
 0x16b   :  { %335 = vmatmul.mubr.msk.f32.vlgmr.msra.gmra.mxu1 %vm213_vm5, %v204_v41 }
 0x22b   :  { %v287_v43 = vpop.f32.mrf.mxu1 }
 0x22c   :  { %v288_v44 = vadd.f32 %v316_v42, %v287_v43 }
 0x22d   :  { %v336_v45 = vpop.f32.mrf.mxu1 }
 0x22e   :  { %v319_v46 = vmul.f32 -1.442695, %v288_v44 }
 0x230   :  { %343 = vpow2.f32 %v319_v46 }
 0x23d   :  { %v344_v47 = vpop.eup %343 }
 0x23e   :  { %v294_v48 = vadd.f32 1.0, %v344_v47 }
 0x240   :  { %345 = vrcp.f32 %v294_v48 }
 0x24d   :  { %v346_v49 = vpop.eup %345 }
 0x24e   :  { %298 = vst.msk [vmem:[#allocation6] sm:$0x3] %vm297_vm6, %v346_v49 }
 0x24f   :  { %378 = shalt.err (!%p375_p9)
}
 0x250   :  { %308 = dma.vmem_to_hbm [thread:$0]  %s306_s2, 32, %s453_s5, [#allocation5]  }
 0x251   :  { %389 = dma.done.wait [#allocation5], 32  }
 0x252   :  { %390 = vsyncadd [#allocation5], 4294967264 }
 0x253   :  { %312 = vsyncpa [#allocation4], 1 }
 0x254   :  { %313 = vsyncpa [#allocation5], 1 }

</bundles_post_ra>
